<compile_context>
chip_gen: v5e
topology: v5e:2x2
jax: 0.10.0
libtpu: 0.0.40
codegen_flags: <defaults>
</compile_context>

<pallas_src>
from functools import partial

import jax
import jax.numpy as jnp
from jax.experimental import pallas as pl
from jax.experimental.pallas import tpu as pltpu


def _round_up(x, m):
    return ((x + m - 1) // m) * m


# ---------------------------------------------------------------------------
# Kernel: fused first GEMM ([x0|h0] @ [Wi^T;Wc^T]), tanh, second GEMM.
# All matmul operands bf16, accumulation f32, elementwise f32.
# ---------------------------------------------------------------------------
def srnn_kernel(xh_ref, w1_ref, b1_ref, w2_ref, b2_ref, x1_ref, h1_ref):
    h_pre = jnp.dot(xh_ref[...], w1_ref[...],
                    preferred_element_type=jnp.float32) + b1_ref[...]
    h1 = jnp.tanh(h_pre)                                            # f32 EUP
    x1 = jnp.dot(h1.astype(w2_ref.dtype), w2_ref[...],
                 preferred_element_type=jnp.float32) + b2_ref[...]
    h1_ref[...] = h1.astype(h1_ref.dtype)
    x1_ref[...] = x1.astype(x1_ref.dtype)


# ---------------------------------------------------------------------------
# One-time parameter preparation (transpose, fuse, pre-sum bias, pad, bf16).
# ---------------------------------------------------------------------------
def prepare_params(params, isize, hsize, w_dtype=jnp.bfloat16):
    isize_p = _round_up(isize, 128)
    hsize_p = _round_up(hsize, 128)
    k_p = isize_p + hsize_p

    # Fused first-layer weight: rows [0,isize)=Wi^T, rows [isize_p,+hsize)=Wc^T
    # (row offsets match the lane offsets of the fused activation buffer).
    w1 = jnp.zeros((k_p, hsize_p), w_dtype)
    w1 = w1.at[:isize, :hsize].set(params["Wi"].T.astype(w_dtype))
    w1 = w1.at[isize_p:isize_p + hsize, :hsize].set(params["Wc"].T.astype(w_dtype))
    b1 = jnp.zeros((1, hsize_p), jnp.float32)
    b1 = b1.at[0, :hsize].set((params["bi"] + params["bc"]).astype(jnp.float32))

    # Second layer: Wh^T padded.
    w2 = jnp.zeros((hsize_p, isize_p), w_dtype)
    w2 = w2.at[:hsize, :isize].set(params["Wh"].T.astype(w_dtype))
    b2 = jnp.zeros((1, isize_p), jnp.float32)
    b2 = b2.at[0, :isize].set(params["bh"].astype(jnp.float32))

    return {"W1": w1, "b1": b1, "W2": w2, "b2": b2,
            "isize": isize, "hsize": hsize,
            "isize_p": isize_p, "hsize_p": hsize_p}


# ---------------------------------------------------------------------------
# Forward wrapper (jitted so pad/slice fuse around the single pallas_call).
# ---------------------------------------------------------------------------
@partial(jax.jit, static_argnames=("isize", "hsize", "isize_p", "hsize_p"))
def _srnn_forward_impl(x0, h0, W1, b1, W2, b2, *,
                       isize, hsize, isize_p, hsize_p):
    B = x0.shape[0]
    k_p = isize_p + hsize_p
    out_dtype = x0.dtype

    # Batch tile: multiple of 8 sublanes; cap at 128 rows per grid step.
    tile_b = min(128, _round_up(B, 8))
    B_p = _round_up(B, tile_b)
    grid_b = B_p // tile_b

    # Single fused activation buffer: x0 -> lanes [0:isize],
    # h0 -> lanes [isize_p:isize_p+hsize].  bf16 for the MXU path.
    xh = jnp.zeros((B_p, k_p), jnp.bfloat16)
    xh = xh.at[:B, :isize].set(x0.astype(jnp.bfloat16))
    xh = xh.at[:B, isize_p:isize_p + hsize].set(h0.astype(jnp.bfloat16))

    # Actual VMEM footprint (double buffers on tiled operands) + 2x headroom,
    # clamped to stay well under v7x's 64 MiB per-TC VMEM.
    vmem_need = 2 * (
        2 * tile_b * k_p * 2              # xh tiles (bf16, double-buffered)
        + k_p * hsize_p * 2               # W1 (resident)
        + hsize_p * isize_p * 2           # W2 (resident)
        + (hsize_p + isize_p) * 4         # biases
        + 2 * tile_b * isize_p * 4        # x1 tiles (f32, double-buffered)
        + 2 * tile_b * hsize_p * 4        # h1 tiles (f32, double-buffered)
    )
    vmem_limit = int(min(max(vmem_need, 4 * 1024 * 1024), 48 * 1024 * 1024))

    x1p, h1p = pl.pallas_call(
        srnn_kernel,
        out_shape=(
            jax.ShapeDtypeStruct((B_p, isize_p), out_dtype),   # x1 (padded)
            jax.ShapeDtypeStruct((B_p, hsize_p), out_dtype),   # h1 (padded)
        ),
        grid=(grid_b,),
        in_specs=[
            pl.BlockSpec((tile_b, k_p), lambda i: (i, 0)),       # xh (tiled)
            pl.BlockSpec((k_p, hsize_p), lambda i: (0, 0)),      # W1 (resident)
            pl.BlockSpec((1, hsize_p), lambda i: (0, 0)),        # b1 (resident)
            pl.BlockSpec((hsize_p, isize_p), lambda i: (0, 0)),  # W2 (resident)
            pl.BlockSpec((1, isize_p), lambda i: (0, 0)),        # b2 (resident)
        ],
        out_specs=(
            pl.BlockSpec((tile_b, isize_p), lambda i: (i, 0)),   # x1
            pl.BlockSpec((tile_b, hsize_p), lambda i: (i, 0)),   # h1
        ),
        compiler_params=pltpu.CompilerParams(
            dimension_semantics=("parallel",),
            vmem_limit_bytes=vmem_limit),
    )(xh, W1, b1, W2, b2)

    return x1p[:B, :isize], h1p[:B, :hsize]


def srnn_forward(x0, h0, prepped):
    return _srnn_forward_impl(
        x0, h0, prepped["W1"], prepped["b1"], prepped["W2"], prepped["b2"],
        isize=prepped["isize"], hsize=prepped["hsize"],
        isize_p=prepped["isize_p"], hsize_p=prepped["hsize_p"])


# ---------------------------------------------------------------------------
# Param init matching torch.nn.Linear defaults; pure-JAX f32 reference.
# ---------------------------------------------------------------------------
def init_params(key, isize, hsize, osize):
    ks = jax.random.split(key, 8)

    def lin(kw, kb, fan_in, fan_out):
        bound = 1.0 / jnp.sqrt(fan_in)
        w = jax.random.uniform(kw, (fan_out, fan_in), jnp.float32, -bound, bound)
        b = jax.random.uniform(kb, (fan_out,), jnp.float32, -bound, bound)
        return w, b

    Wi, bi = lin(ks[0], ks[1], isize, hsize)
    Wc, bc = lin(ks[2], ks[3], hsize, hsize)
    Wh, bh = lin(ks[4], ks[5], hsize, isize)
    Wo, bo = lin(ks[6], ks[7], hsize, osize)   # predict() head, unused by forward()
    return {"Wi": Wi, "bi": bi, "Wc": Wc, "bc": bc,
            "Wh": Wh, "bh": bh, "Wo": Wo, "bo": bo}


def srnn_ref(x0, h0, p):
    h1 = jnp.tanh(x0 @ p["Wi"].T + p["bi"] + h0 @ p["Wc"].T + p["bc"])
    x1 = h1 @ p["Wh"].T + p["bh"]
    return x1, h1


if __name__ == "__main__":
    B, isize, hsize, osize = 2, 16, 32, 8
    key = jax.random.PRNGKey(0)
    kp, kx, kh = jax.random.split(key, 3)

    params = init_params(kp, isize, hsize, osize)
    prepped = prepare_params(params, isize, hsize)     # one-time weight prep (bf16)

    x0 = jax.random.normal(kx, (B, isize), jnp.float32)
    h0 = jnp.zeros((B, hsize), jnp.float32)             # SRNN.context(B)

    x1, h1 = srnn_forward(x0, h0, prepped)
    jax.block_until_ready((x1, h1))

    x1_ref, h1_ref = srnn_ref(x0, h0, params)
    assert x1.shape == (B, isize) and h1.shape == (B, hsize)
    # bf16 MXU inputs with f32 accumulation -> relaxed tolerance vs f32 ref.
    assert jnp.allclose(x1, x1_ref, atol=2e-2, rtol=2e-2), "x1 mismatch"
    assert jnp.allclose(h1, h1_ref, atol=2e-2, rtol=2e-2), "h1 mismatch"

    print("KERNEL_OK")
</pallas_src>

<mosaic_0001>
module attributes {stable_mosaic.version = 11 : i64} {
  func.func @srnn_kernel(%arg0: i32, %arg1: memref<8x256xbf16, #tpu.memory_space<vmem>>, %arg2: memref<256x128xbf16, #tpu.memory_space<vmem>>, %arg3: memref<1x128xf32, #tpu.memory_space<vmem>>, %arg4: memref<128x128xbf16, #tpu.memory_space<vmem>>, %arg5: memref<1x128xf32, #tpu.memory_space<vmem>>, %arg6: memref<8x128xf32, #tpu.memory_space<vmem>>, %arg7: memref<8x128xf32, #tpu.memory_space<vmem>>) attributes {dimension_semantics = [#tpu.dimension_semantics<parallel>], iteration_bounds = array<i64: 1>, scalar_prefetch = 0 : i64, scratch_operands = 0 : i64, tpu.core_type = #tpu.core_type<tc>, window_params = [{transform_indices = @transform_0, window_bounds = array<i64: 8, 256>}, {pipeline_mode = #tpu.pipeline_mode<synchronous>, transform_indices = @transform_1, window_bounds = array<i64: 256, 128>}, {pipeline_mode = #tpu.pipeline_mode<synchronous>, transform_indices = @transform_2, window_bounds = array<i64: 1, 128>}, {pipeline_mode = #tpu.pipeline_mode<synchronous>, transform_indices = @transform_3, window_bounds = array<i64: 128, 128>}, {pipeline_mode = #tpu.pipeline_mode<synchronous>, transform_indices = @transform_4, window_bounds = array<i64: 1, 128>}, {transform_indices = @transform_5, window_bounds = array<i64: 8, 128>}, {transform_indices = @transform_6, window_bounds = array<i64: 8, 128>}]} {
    %c0 = arith.constant 0 : index
    %c0_0 = arith.constant 0 : index
    %0 = vector.load %arg1[%c0, %c0_0] : memref<8x256xbf16, #tpu.memory_space<vmem>>, vector<8x256xbf16>
    %c0_1 = arith.constant 0 : index
    %c0_2 = arith.constant 0 : index
    %1 = vector.load %arg2[%c0_1, %c0_2] : memref<256x128xbf16, #tpu.memory_space<vmem>>, vector<256x128xbf16>
    %cst = arith.constant dense<0.000000e+00> : vector<8x128xf32>
    %2 = tpu.matmul %0, %1, %cst {dimension_numbers = #tpu.dot_dimension_numbers<[1], [0], [0], [1], [0, 0, 1, 1], [], []>} : vector<8x256xbf16>, vector<256x128xbf16>, vector<8x128xf32> -> vector<8x128xf32>
    %c0_3 = arith.constant 0 : index
    %c0_4 = arith.constant 0 : index
    %3 = vector.load %arg3[%c0_3, %c0_4] : memref<1x128xf32, #tpu.memory_space<vmem>>, vector<1x128xf32>
    %4 = vector.broadcast %3 : vector<1x128xf32> to vector<8x128xf32>
    %5 = arith.addf %2, %4 : vector<8x128xf32>
    %6 = math.tanh %5 : vector<8x128xf32>
    %7 = arith.truncf %6 : vector<8x128xf32> to vector<8x128xbf16>
    %c0_5 = arith.constant 0 : index
    %c0_6 = arith.constant 0 : index
    %8 = vector.load %arg4[%c0_5, %c0_6] : memref<128x128xbf16, #tpu.memory_space<vmem>>, vector<128x128xbf16>
    %cst_7 = arith.constant dense<0.000000e+00> : vector<8x128xf32>
    %9 = tpu.matmul %7, %8, %cst_7 {dimension_numbers = #tpu.dot_dimension_numbers<[1], [0], [0], [1], [0, 0, 1, 1], [], []>} : vector<8x128xbf16>, vector<128x128xbf16>, vector<8x128xf32> -> vector<8x128xf32>
    %c0_8 = arith.constant 0 : index
    %c0_9 = arith.constant 0 : index
    %10 = vector.load %arg5[%c0_8, %c0_9] : memref<1x128xf32, #tpu.memory_space<vmem>>, vector<1x128xf32>
    %11 = vector.broadcast %10 : vector<1x128xf32> to vector<8x128xf32>
    %12 = arith.addf %9, %11 : vector<8x128xf32>
    %c0_10 = arith.constant 0 : index
    %c0_11 = arith.constant 0 : index
    %13 = vector.load %arg7[%c0_10, %c0_11] : memref<8x128xf32, #tpu.memory_space<vmem>>, vector<8x128xf32>
    tpu.vector_store %arg7[%c0_10, %c0_11], %6 {strides = array<i32>} : memref<8x128xf32, #tpu.memory_space<vmem>>, vector<8x128xf32>,
    %c0_12 = arith.constant 0 : index
    %c0_13 = arith.constant 0 : index
    %14 = vector.load %arg6[%c0_12, %c0_13] : memref<8x128xf32, #tpu.memory_space<vmem>>, vector<8x128xf32>
    tpu.vector_store %arg6[%c0_12, %c0_13], %12 {strides = array<i32>} : memref<8x128xf32, #tpu.memory_space<vmem>>, vector<8x128xf32>,
    return
  }
  func.func @transform_0(%arg0: i32) -> (i32, i32) {
    %c0_i32 = arith.constant 0 : i32
    %c0_i32_0 = arith.constant 0 : i32
    return %arg0, %c0_i32 : i32, i32
  }
  func.func @transform_1(%arg0: i32) -> (i32, i32) {
    %c0_i32 = arith.constant 0 : i32
    %c0_i32_0 = arith.constant 0 : i32
    %c0_i32_1 = arith.constant 0 : i32
    return %c0_i32, %c0_i32_0 : i32, i32
  }
  func.func @transform_2(%arg0: i32) -> (i32, i32) {
    %c0_i32 = arith.constant 0 : i32
    %c0_i32_0 = arith.constant 0 : i32
    %c0_i32_1 = arith.constant 0 : i32
    return %c0_i32, %c0_i32_0 : i32, i32
  }
  func.func @transform_3(%arg0: i32) -> (i32, i32) {
    %c0_i32 = arith.constant 0 : i32
    %c0_i32_0 = arith.constant 0 : i32
    %c0_i32_1 = arith.constant 0 : i32
    return %c0_i32, %c0_i32_0 : i32, i32
  }
  func.func @transform_4(%arg0: i32) -> (i32, i32) {
    %c0_i32 = arith.constant 0 : i32
    %c0_i32_0 = arith.constant 0 : i32
    %c0_i32_1 = arith.constant 0 : i32
    return %c0_i32, %c0_i32_0 : i32, i32
  }
  func.func @transform_5(%arg0: i32) -> (i32, i32) {
    %c0_i32 = arith.constant 0 : i32
    %c0_i32_0 = arith.constant 0 : i32
    return %arg0, %c0_i32 : i32, i32
  }
  func.func @transform_6(%arg0: i32) -> (i32, i32) {
    %c0_i32 = arith.constant 0 : i32
    %c0_i32_0 = arith.constant 0 : i32
    return %arg0, %c0_i32 : i32, i32
  }
}

</mosaic_0001>

<bundles_post_ra>
// kernel: _srnn_forward_impl.1
= control target key start
LH: loop header
LB: loop body
LE: loop exit
PB: predicated region body
PF: predicated region fallthrough
CT: control target
= control target key end

     0   :  { %12 = vsyncpa [#allocation3], 0  ;;  %s555_s0 = inlined_call_operand.vmem [shape: bf16[8,256], index: 0, kind: input, shape index: {}]   ;;  %s556_s1 = inlined_call_operand.hbm [shape: bf16[256,128], index: 1, kind: input, shape index: {}]   ;;  %s557_s2 = inlined_call_operand.vmem [shape: f32[1,128], index: 2, kind: input, shape index: {}]   ;;  %s558_s3 = inlined_call_operand.hbm [shape: bf16[128,128], index: 3, kind: input, shape index: {}]   ;;  %s559_s4 = inlined_call_operand.vmem [shape: f32[1,128], index: 4, kind: input, shape index: {}]   ;;  %s560_s5 = inlined_call_operand.vmem [shape: f32[8,128], index: 5, kind: output, shape index: {0}]   ;;  %s561_s6 = inlined_call_operand.vmem [shape: f32[8,128], index: 6, kind: output, shape index: {1}]  }
   0x1   :  { %s20_s23 = sshll.u32 %s556_s1, 4  ;;  %s21_s23 = int_to_ptr.hbm [resolvable:$true] %s20_s23 }
   0x2   :  { %13 = vsyncpa [#allocation5], 0  ;;  %s495_s24 = smov [#allocation2]   ;;  %s35_s28 = sshll.u32 %s558_s3, 4  ;;  %s36_s28 = int_to_ptr.hbm [resolvable:$true] %s35_s28 }
   0x3   :  { %s22_s25 = sshll.u32 %s495_s24, 4  ;;  %s496_s29 = smov 64   ;;  %s23_s25 = int_to_ptr.vmem [resolvable:$true] %s22_s25 }
   0x4   :  { %s497_s30 = smov 4   ;;  %s498_s7 = smov [#allocation4]  }
   0x5   :  { %28 = dma.hbm_to_vmem [thread:$0]  %s21_s23, 2048, %s23_s25, [#allocation3], %s496_s29, %s496_s29, %s497_s30  }
   0x6   :  { %s37_s8 = sshll.u32 %s498_s7, 4  ;;  %s38_s8 = int_to_ptr.vmem [resolvable:$true] %s37_s8 }
   0x7   :  { %43 = dma.hbm_to_vmem [thread:$0]  %s36_s28, 1024, %s38_s8, [#allocation5], %s496_s29, %s496_s29, %s497_s30  }
   0x8   :  { %491 = dma.done.wait [#allocation3], 2048  }
   0x9   :  { %492 = vsyncadd [#allocation3], 4294965248 }
   0xa   :  { %493 = dma.done.wait [#allocation5], 1024  }
   0xb   :  { %494 = vsyncadd [#allocation5], 4294966272  ;;  %v418_v0 = vld [vmem:[#allocation2 + $0x38] sm:$0xff]  ;;  %v417_v2 = vld [vmem:[#allocation2 + $0x30] sm:$0xff] }
   0xc   :  { %v426_v1 = vld [vmem:[#allocation2 + $0x78] sm:$0xff]  ;;  %194 = vmatpush.bf16.msra.mxu0 %v418_v0  ;;  %v425_v3 = vld [vmem:[#allocation2 + $0x70] sm:$0xff]  ;;  %v416_v5 = vld [vmem:[#allocation2 + $0x28] sm:$0xff] }
   0xd   :  { %207 = vmatpush.bf16.msra.mxu1 %v426_v1  ;;  %v434_v4 = vld [vmem:[#allocation4 + $0x38] sm:$0xff]  ;;  %v424_v6 = vld [vmem:[#allocation2 + $0x68] sm:$0xff]  ;;  %v433_v7 = vld [vmem:[#allocation4 + $0x30] sm:$0xff] }
   0xe   :  { %290 = vmatpush.bf16.msra.mxu2 %v434_v4  ;;  %v415_v8 = vld [vmem:[#allocation2 + $0x20] sm:$0xff]  ;;  %v432_v10 = vld [vmem:[#allocation4 + $0x28] sm:$0xff]  ;;  %v414_v11 = vld [vmem:[#allocation2 + $0x18] sm:$0xff] }
   0xf   :  { %v423_v9 = vld [vmem:[#allocation2 + $0x60] sm:$0xff]  ;;  %v422_v12 = vld [vmem:[#allocation2 + $0x58] sm:$0xff]  ;;  %v413_v14 = vld [vmem:[#allocation2 + $0x10] sm:$0xff] }
  0x10   :  { %195 = vmatpush.bf16.msra.mxu0 %v417_v2  ;;  %v431_v13 = vld [vmem:[#allocation4 + $0x20] sm:$0xff]  ;;  %v421_v15 = vld [vmem:[#allocation2 + $0x50] sm:$0xff]  ;;  %v430_v16 = vld [vmem:[#allocation4 + $0x18] sm:$0xff] }
  0x11   :  { %208 = vmatpush.bf16.msra.mxu1 %v425_v3  ;;  %v412_v17 = vld [vmem:[#allocation2 + $0x8] sm:$0xff]  ;;  %v54_v19 = vld [vmem:[%s555_s0] sm:$0xff]  ;;  %v429_v26 = vld [vmem:[#allocation4 + $0x10] sm:$0xff] }
  0x12   :  { %291 = vmatpush.bf16.msra.mxu2 %v433_v7  ;;  %v420_v18 = vld [vmem:[#allocation2 + $0x48] sm:$0xff]  ;;  %v92_v20 = vunpack.c.l.b16 %v54_v19  ;;  %v93_v21 = vunpack.c.h.b16 %v54_v19  ;;  %v411_v22 = vld [vmem:[#allocation2] sm:$0xff] }
  0x13   :  { %v419_v23 = vld [vmem:[#allocation2 + $0x40] sm:$0xff]  ;;  %v428_v27 = vld [vmem:[#allocation4 + $0x8] sm:$0xff] }
  0x14   :  { %196 = vmatpush.bf16.msra.mxu0 %v416_v5  ;;  %v94_v24 = vpack.c.b16 %v92_v20, %v92_v20  ;;  %v95_v25 = vpack.c.b16 %v93_v21, %v93_v21  ;;  %v427_v28 = vld [vmem:[#allocation4] sm:$0xff] }
  0x15   :  { %209 = vmatpush.bf16.msra.mxu1 %v424_v6  ;;  %v439_v29 = vld [vmem:[%s557_s2] ss:$0 sm:$0xff] }
  0x16   :  { %292 = vmatpush.bf16.msra.mxu2 %v432_v10  ;;  %v440_v38 = vld [vmem:[%s559_s4] ss:$0 sm:$0xff] }
  0x18   :  { %197 = vmatpush.bf16.msra.mxu0 %v415_v8 }
  0x19   :  { %210 = vmatpush.bf16.msra.mxu1 %v423_v9 }
  0x1a   :  { %293 = vmatpush.bf16.msra.mxu2 %v431_v13 }
  0x1c   :  { %198 = vmatpush.bf16.msra.mxu0 %v414_v11 }
  0x1d   :  { %211 = vmatpush.bf16.msra.mxu1 %v422_v12 }
  0x1e   :  { %294 = vmatpush.bf16.msra.mxu2 %v430_v16 }
  0x20   :  { %199 = vmatpush.bf16.msra.mxu0 %v413_v14 }
  0x21   :  { %212 = vmatpush.bf16.msra.mxu1 %v421_v15 }
  0x22   :  { %295 = vmatpush.bf16.msra.mxu2 %v429_v26 }
  0x24   :  { %200 = vmatpush.bf16.msra.mxu0 %v412_v17 }
  0x25   :  { %213 = vmatpush.bf16.msra.mxu1 %v420_v18 }
  0x26   :  { %296 = vmatpush.bf16.msra.mxu2 %v428_v27 }
  0x28   :  { %201 = vmatpush.bf16.msra.mxu0 %v411_v22 }
  0x29   :  { %214 = vmatpush.bf16.msra.mxu1 %v419_v23 }
  0x2a   :  { %297 = vmatpush.bf16.msra.mxu2 %v427_v28 }
  0x2b   :  { %202 = vmatmul.bf16.vlgmr.msra.gmra.mxu0 %v94_v24 }
  0x2c   :  { %215 = vmatmul.bf16.vlgmr.msra.gmra.mxu1 %v95_v25 }
  0xa8   :  { %v203_v30 = vpop.f32.mrf.mxu0 }
  0xa9   :  { %v216_v31 = vpop.f32.mrf.mxu1  ;;  %v204_v32 = vadd.f32 %v439_v29, %v203_v30 }
  0xab   :  { %v217_v33 = vadd.f32 %v216_v31, %v204_v32 }
  0xad   :  { %441 = vtanh.f32 %v217_v33 }
  0xb0   :  { %v205_v34 = vpop.f32.mrf.mxu0 }
  0xb1   :  { %v218_v35 = vpop.f32.mrf.mxu1 }
  0xb3   :  { %v442_v36 = vpop.eup %441 }
  0xb4   :  { %303 = vst [vmem:[%s561_s6] sm:$0xff] %v442_v36  ;;  %v221_v37 = vpack.c.bf16 %v442_v36, %v442_v36 }
  0xb6   :  { %298 = vmatmul.bf16.vlgmr.msra.gmra.mxu2 %v221_v37 }
 0x139   :  { %v299_v39 = vpop.f32.mrf.mxu2 }
 0x13a   :  { %v300_v40 = vadd.f32 %v440_v38, %v299_v39 }
 0x13c   :  { %304 = vst [vmem:[%s560_s5] sm:$0xff] %v300_v40 }
 0x141   :  { %v301_v41 = vpop.f32.mrf.mxu2 }
 0x142   :  { %313 = vsyncpa [#allocation3], 1 }
 0x143   :  { %314 = vsyncpa [#allocation5], 1 }

</bundles_post_ra>
